<compile_context>
chip_gen: v7x
topology: tpu7x:2x2x1
jax: 0.10.0
libtpu: 0.0.40
codegen_flags: <defaults>
</compile_context>

<pallas_src>
import jax
import jax.numpy as jnp
from jax.experimental import pallas as pl
from jax.experimental.pallas import tpu as pltpu

_BN_EPS = 1e-5


def _round_up(x, m):
    return (x + m - 1) // m * m


# ----------------------------- Pallas kernel ---------------------------------
def _odconv_kernel(patch_ref, w_ref, o_ref):
    """Grid = (batch, cout_tile, pixel_tile).  One step == one MXU matmul.

    patch_ref: (1, TP, L_pad)  bf16 im2col patches (channel+spatial attn pre-folded)
    w_ref:     (1, L_pad, TN)  bf16 per-batch aggregated weight (kernel+filter attn folded)
    o_ref:     (1, TP, TN)     bf16 output tile
    """
    o_ref[0] = jnp.dot(patch_ref[0], w_ref[0],
                       preferred_element_type=jnp.float32).astype(o_ref.dtype)


# ----------------------------- attention head (glue) -------------------------
def _attention_forward(x, params, temperature):
    # x: (B, Cin, H, W)
    pooled = jnp.mean(x, axis=(2, 3))                          # AdaptiveAvgPool2d(1) -> (B, Cin)
    t = pooled @ params["fc_w"].T                              # 1x1 conv, no bias -> (B, A)
    t = t / jnp.sqrt(1.0 + _BN_EPS)                            # BN (eval mode, see NOTE above)
    t = jax.nn.relu(t)
    ch = jax.nn.sigmoid((t @ params["channel_w"].T + params["channel_b"]) / temperature)   # (B, Cin)
    fil = jax.nn.sigmoid((t @ params["filter_w"].T + params["filter_b"]) / temperature)    # (B, Cout)
    sp = jax.nn.sigmoid((t @ params["spatial_w"].T + params["spatial_b"]) / temperature)   # (B, KH*KW)
    ker = jax.nn.softmax((t @ params["kernel_w"].T + params["kernel_b"]) / temperature,
                         axis=1)                                                           # (B, K)
    return ch, fil, sp, ker


# ----------------------------- tiling helpers --------------------------------
def _vmem_budget():
    """~85% of per-core VMEM capacity (v5e/v6e: 128 MiB, v7x: 64 MiB per TC)."""
    cap = 64 * 1024 * 1024
    try:
        cap = int(getattr(pltpu.get_tpu_info(), "vmem_capacity_bytes", cap))
    except Exception:   # not on TPU / API change: conservative fallback (safe on all gens)
        pass
    return max(int(cap * 0.85), 16 * 1024 * 1024)


def _pick_tiles(P, L_pad, Cout_pad, budget):
    """Largest (pixel-tile, cout-tile) whose double-buffered VMEM footprint fits."""
    P8 = _round_up(P, 8)
    tp_cands = [t for t in (1024, 512, 256, 128, 64, 32, 16, 8) if t < P8]
    if P8 <= 1024:
        tp_cands = [P8] + tp_cands
    tn_cands = [Cout_pad] + [t for t in (512, 256, 128)
                             if t < Cout_pad and Cout_pad % t == 0]

    def tile_bytes(tp, tn):
        return (2 * tp * L_pad * 2        # patch tile (bf16), double-buffered
                + 2 * L_pad * tn * 2      # aggregated-weight tile (bf16), double-buffered
                + 2 * tp * tn * 2)        # output tile (bf16), double-buffered

    for tn in tn_cands:
        for tp in tp_cands:
            if tile_bytes(tp, tn) <= budget:
                return tp, tn
    return 8, 128


# ----------------------------- wrapper ---------------------------------------
def odconv2d_forward(x, params, *, stride=1, padding=0, dilation=1, groups=1,
                     temperature=1.0):
    assert groups == 1  # TODO(synk): grouped conv (groups > 1) not implemented in Pallas path
    B, Cin, H, W = x.shape
    weight = params["weight"]                                  # (K, Cout, Cin, KH, KW)
    K, Cout, _, KH, KW = weight.shape

    ch_attn, fil_attn, sp_attn, ker_attn = _attention_forward(x, params, temperature)

    Hout = (H + 2 * padding - dilation * (KH - 1) - 1) // stride + 1
    Wout = (W + 2 * padding - dilation * (KW - 1) - 1) // stride + 1
    P = Hout * Wout
    L = KH * KW * Cin

    # Lane-dense padding (128 lanes) for the contraction and output axes.
    L_pad = _round_up(L, 128)
    Cout_pad = _round_up(Cout, 128)

    # Per-batch aggregated weight in glue (kernel attention + filter attention folded).
    # f32 aggregation, single bf16 cast afterwards.
    w_flat = weight.transpose(0, 3, 4, 2, 1).reshape(K, L, Cout)      # L order = (kh, kw, cin)
    w_agg = jnp.einsum("bk,klc->blc", ker_attn, w_flat,
                       precision=jax.lax.Precision.HIGHEST)           # (B, L, Cout) f32
    w_agg = w_agg * fil_attn[:, None, :]                              # fold filter attention
    w_agg = jnp.pad(w_agg.astype(jnp.bfloat16),
                    ((0, 0), (0, L_pad - L), (0, Cout_pad - Cout)))   # (B, L_pad, Cout_pad)

    # im2col patches: NHWC tap slices with channel + spatial attention folded in, bf16
    # from the start; stacked so the final (B, P, L) reshape is contiguous (no f32 slab
    # and no large 5-D transpose ever written to HBM).
    # TODO(synk): for strongly HBM-bound configs (large Cin), stream x per pixel tile
    # and accumulate the KH*KW per-tap dots in-kernel instead of materializing the
    # KH*KW-times-larger patch slab.
    x_nhwc = (x.transpose(0, 2, 3, 1) * ch_attn[:, None, None, :]).astype(jnp.bfloat16)
    x_padd = jnp.pad(x_nhwc, ((0, 0), (padding, padding), (padding, padding), (0, 0)))
    sp_bf = sp_attn.astype(jnp.bfloat16)
    taps = []
    for kh in range(KH):
        for kw in range(KW):
            sl = jax.lax.slice(
                x_padd,
                (0, kh * dilation, kw * dilation, 0),
                (B,
                 kh * dilation + (Hout - 1) * stride + 1,
                 kw * dilation + (Wout - 1) * stride + 1,
                 Cin),
                (1, stride, stride, 1))                        # (B, Hout, Wout, Cin)
            taps.append(sl * sp_bf[:, kh * KW + kw][:, None, None, None])
    patches = jnp.stack(taps, axis=3).reshape(B, P, L)         # contiguous reshape, bf16

    # Generation-aware tiling: size the pixel / Cout tiles against the queried VMEM
    # budget instead of a fixed 64 MiB cap.
    budget = _vmem_budget()
    TP, TN = _pick_tiles(P, L_pad, Cout_pad, budget)
    P_pad = _round_up(P, TP)
    num_pt = P_pad // TP
    num_nt = Cout_pad // TN

    patches = jnp.pad(patches, ((0, 0), (0, P_pad - P), (0, L_pad - L)))

    out = pl.pallas_call(
        _odconv_kernel,
        out_shape=jax.ShapeDtypeStruct((B, P_pad, Cout_pad), jnp.bfloat16),
        grid_spec=pltpu.PrefetchScalarGridSpec(
            num_scalar_prefetch=0,
            # Pixel axis innermost: the aggregated-weight block index is constant
            # across it, so its DMA is re-issued only at (b, n) boundaries.
            grid=(B, num_nt, num_pt),
            in_specs=[
                pl.BlockSpec((1, TP, L_pad), lambda b, n, p: (b, p, 0)),    # patches
                pl.BlockSpec((1, L_pad, TN), lambda b, n, p: (b, 0, n)),    # agg. weight
            ],
            out_specs=pl.BlockSpec((1, TP, TN), lambda b, n, p: (b, p, n)),
        ),
        compiler_params=pltpu.CompilerParams(
            dimension_semantics=("parallel", "parallel", "parallel"),
            vmem_limit_bytes=budget),
    )(patches, w_agg)

    out = out[:, :P, :Cout]
    # Back to PyTorch NCHW / f32 (cast fuses with the transpose in XLA).
    # TODO(synk): offer NHWC/bf16 output to skip this transpose when the downstream
    # consumer accepts channels-last.
    return out.reshape(B, Hout, Wout, Cout).transpose(0, 3, 1, 2).astype(jnp.float32)


# ----------------------------- params (deterministic) ------------------------
def init_params(key, in_channels, out_channels, kernel_size, kernel_num,
                reduction=0.0625, min_channels=16):
    A = max(int(in_channels * reduction), min_channels)        # attention_channels
    ks = jax.random.split(key, 6)

    def kaiming_out(k, shape, fan_out):  # kaiming_normal_, mode='fan_out', relu
        return (jnp.sqrt(2.0 / fan_out) * jax.random.normal(k, shape)).astype(jnp.float32)

    return {
        "fc_w": kaiming_out(ks[0], (A, in_channels), A),
        "channel_w": kaiming_out(ks[1], (in_channels, A), in_channels),
        "channel_b": jnp.zeros((in_channels,), jnp.float32),
        "filter_w": kaiming_out(ks[2], (out_channels, A), out_channels),
        "filter_b": jnp.zeros((out_channels,), jnp.float32),
        "spatial_w": kaiming_out(ks[3], (kernel_size * kernel_size, A),
                                 kernel_size * kernel_size),
        "spatial_b": jnp.zeros((kernel_size * kernel_size,), jnp.float32),
        "kernel_w": kaiming_out(ks[4], (kernel_num, A), kernel_num),
        "kernel_b": jnp.zeros((kernel_num,), jnp.float32),
        "weight": kaiming_out(
            ks[5], (kernel_num, out_channels, in_channels, kernel_size, kernel_size),
            out_channels * kernel_size * kernel_size),
    }


# ----------------------------- pure-JAX reference ----------------------------
def reference_forward(x, params, *, stride=1, padding=0, dilation=1, temperature=1.0):
    B, Cin, H, W = x.shape
    weight = params["weight"]
    K, Cout, _, KH, KW = weight.shape
    ch, fil, sp, ker = _attention_forward(x, params, temperature)
    xs = x * ch[:, :, None, None]
    agg = jnp.einsum("bk,bij,kocij->bocij", ker, sp.reshape(B, KH, KW), weight)

    def conv_one(xi, wi):
        return jax.lax.conv_general_dilated(
            xi[None], wi, window_strides=(stride, stride),
            padding=[(padding, padding), (padding, padding)],
            rhs_dilation=(dilation, dilation),
            dimension_numbers=("NCHW", "OIHW", "NCHW"),
            precision=jax.lax.Precision.HIGHEST)[0]

    out = jax.vmap(conv_one)(xs, agg)
    return out * fil[:, :, None, None]


if __name__ == "__main__":
    B, Cin, H, W = 2, 4, 16, 16
    Cout, kernel_size, kernel_num = 8, 3, 4

    key = jax.random.PRNGKey(0)
    k_param, k_x = jax.random.split(key)
    params = init_params(k_param, Cin, Cout, kernel_size, kernel_num)
    x = jax.random.normal(k_x, (B, Cin, H, W), jnp.float32)

    out = odconv2d_forward(x, params)          # defaults: stride=1, padding=0, dilation=1
    out = jax.block_until_ready(out)

    ref = reference_forward(x, params)
    assert out.shape == ref.shape == (B, Cout, H - kernel_size + 1, W - kernel_size + 1), \
        (out.shape, ref.shape)
    assert jnp.allclose(out, ref, atol=1e-2, rtol=1e-2), \
        float(jnp.max(jnp.abs(out - ref)))

    print("KERNEL_OK")
</pallas_src>

<mosaic_0001>
module attributes {stable_mosaic.version = 11 : i64} {
  func.func @_odconv_kernel(%arg0: i32, %arg1: i32, %arg2: i32, %arg3: memref<1x200x128xbf16, #tpu.memory_space<vmem>>, %arg4: memref<1x128x128xbf16, #tpu.memory_space<vmem>>, %arg5: memref<1x200x128xbf16, #tpu.memory_space<vmem>>) attributes {dimension_semantics = [#tpu.dimension_semantics<parallel>, #tpu.dimension_semantics<parallel>, #tpu.dimension_semantics<parallel>], iteration_bounds = array<i64: 2, 1, 1>, scalar_prefetch = 0 : i64, scratch_operands = 0 : i64, tpu.core_type = #tpu.core_type<tc>, window_params = [{transform_indices = @transform_0, window_bounds = array<i64: 1, 200, 128>}, {transform_indices = @transform_1, window_bounds = array<i64: 1, 128, 128>}, {transform_indices = @transform_2, window_bounds = array<i64: 1, 200, 128>}]} {
    %c0 = arith.constant 0 : index
    %c0_0 = arith.constant 0 : index
    %c0_1 = arith.constant 0 : index
    %0 = vector.load %arg3[%c0, %c0_0, %c0_1] : memref<1x200x128xbf16, #tpu.memory_space<vmem>>, vector<1x200x128xbf16>
    %1 = vector.shape_cast %0 : vector<1x200x128xbf16> to vector<200x128xbf16>
    %c0_2 = arith.constant 0 : index
    %c0_3 = arith.constant 0 : index
    %c0_4 = arith.constant 0 : index
    %2 = vector.load %arg4[%c0_2, %c0_3, %c0_4] : memref<1x128x128xbf16, #tpu.memory_space<vmem>>, vector<1x128x128xbf16>
    %3 = vector.shape_cast %2 : vector<1x128x128xbf16> to vector<128x128xbf16>
    %cst = arith.constant dense<0.000000e+00> : vector<200x128xf32>
    %4 = tpu.matmul %1, %3, %cst {dimension_numbers = #tpu.dot_dimension_numbers<[1], [0], [0], [1], [0, 0, 1, 1], [], []>} : vector<200x128xbf16>, vector<128x128xbf16>, vector<200x128xf32> -> vector<200x128xf32>
    %5 = arith.truncf %4 : vector<200x128xf32> to vector<200x128xbf16>
    %c0_5 = arith.constant 0 : index
    %c0_6 = arith.constant 0 : index
    %c0_7 = arith.constant 0 : index
    %6 = vector.load %arg5[%c0_5, %c0_6, %c0_7] : memref<1x200x128xbf16, #tpu.memory_space<vmem>>, vector<1x200x128xbf16>
    %7 = vector.shape_cast %6 : vector<1x200x128xbf16> to vector<200x128xbf16>
    %8 = vector.shape_cast %5 : vector<200x128xbf16> to vector<1x200x128xbf16>
    tpu.vector_store %arg5[%c0_5, %c0_6, %c0_7], %8 {strides = array<i32>} : memref<1x200x128xbf16, #tpu.memory_space<vmem>>, vector<1x200x128xbf16>,
    return
  }
  func.func @transform_0(%arg0: i32, %arg1: i32, %arg2: i32) -> (i32, i32, i32) {
    %c0_i32 = arith.constant 0 : i32
    %c0_i32_0 = arith.constant 0 : i32
    return %arg0, %arg2, %c0_i32 : i32, i32, i32
  }
  func.func @transform_1(%arg0: i32, %arg1: i32, %arg2: i32) -> (i32, i32, i32) {
    %c0_i32 = arith.constant 0 : i32
    %c0_i32_0 = arith.constant 0 : i32
    return %arg0, %c0_i32, %arg1 : i32, i32, i32
  }
  func.func @transform_2(%arg0: i32, %arg1: i32, %arg2: i32) -> (i32, i32, i32) {
    %c0_i32 = arith.constant 0 : i32
    return %arg0, %arg2, %arg1 : i32, i32, i32
  }
}

</mosaic_0001>

<bundles_post_ra>
// kernel: tpu_custom_call.1
= control target key start
LH: loop header
LB: loop body
LE: loop exit
PB: predicated region body
PF: predicated region fallthrough
CT: control target
= control target key end

     0   :  { %7 = vsyncpa [#allocation3], 0  ;;  %s1644_s0 = inlined_call_operand.hbm [shape: bf16[2,200,128], index: 0, kind: input, shape index: {}]   ;;  %s1645_s1 = inlined_call_operand.hbm [shape: bf16[2,128,128], index: 1, kind: input, shape index: {}]   ;;  %s1646_s2 = inlined_call_operand.hbm [shape: bf16[2,200,128], index: 2, kind: output, shape index: {}]  }
   0x1   :  { %9 = vsyncpa [#allocation3 + $0x1], 0 }
   0x2   :  { %10 = vsyncpa [#allocation6], 0 }
   0x3   :  { %12 = vsyncpa [#allocation6 + $0x1], 0 }
   0x4   :  { %13 = vsyncpa [#allocation4], 0 }
   0x5   :  { %15 = vsyncpa [#allocation4 + $0x1], 0  ;;  %s1326_s9 = smov 0   ;;  %s1328_s10 = smov 0  }
   0x6   :  { %s1330_s11 = smov 0   ;;  %s1332_s12 = smov 0  }
   0x7   :  { %s1334_s13 = smov 0   ;;  %s1336_s14 = smov 0  }
   0x8 LB: > { %s795_s15 = sadd.s32 4294967295, %s1300_s14   ;;  %s796_s16 = sadd.s32 4294967294, %s1300_s14   ;;  %s1300_s14 = sphi %s1336_s14, %s21_s14   ;;  %s1296_s13 = sphi %s1334_s13, %s1664_s13   ;;  %s1292_s12 = sphi %s1332_s12, %s1663_s12   ;;  %s1288_s11 = sphi %s1330_s11, %s1662_s11   ;;  %s1284_s10 = sphi %s1328_s10, %s1661_s10   ;;  %s1280_s9 = sphi %s1326_s9, %s1660_s9  }
   0x9   : > { %s40_s17 = sadd.s32 1, %s1296_s13  ;;  %s49_s18 = sadd.s32 1, %s1288_s11 }
   0xa   : > { %p42_p0 = scmp.ge.s32.totalorder %s40_s17, 2  ;;  %p56_p1 = scmp.ne.s32.totalorder %s1288_s11, %s1284_s10 }
   0xb   : > { %p57_p2 = scmp.eq.s32.totalorder %s1300_s14, 0  ;;  %p62_p3 = scmp.ne.s32.totalorder %s1284_s10, %s1280_s9 }
   0xc   : > { %s1666_s17 = smov (%p42_p0, %s40_s17), 0  ;;  %p63_p5 = scmp.eq.s32.totalorder %s795_s15, 0 }
   0xd   : > { %p1367_p4 = por %p57_p2, %p56_p1  ;;  %s44_s20 = ssub.s32 %s1296_s13, %s1666_s17 }
   0xe   : > { %p118_p6 = scmp.eq.s32.totalorder %s795_s15, 1  ;;  %p47_p7 = scmp.eq.s32.totalorder %s44_s20, 0 }
   0xf   : > { %p1373_p8 = por %p63_p5, %p62_p3  ;;  %p124_p10 = scmp.eq.s32.totalorder %s796_s16, 1 }
  0x10   : > { %p1377_p9 = por %p118_p6, %p56_p1  ;;  %p1077_p13 = scmp.lt.s32.totalorder %s1300_s14, 2 }
  0x11   : > { %s1650_s21 = scalar_select %p1373_p8, 1, 0 }
  0x12   : > { %s1651_s22 = scalar_select %p1377_p9, 1, 0 }
  0x13   : > { %s1382_s23 = scalar_select %p47_p7, %s1288_s11, %s49_s18  }
  0x14   : > { %p1384_p11 = por %p124_p10, %p62_p3  ;;  %s1391_s25 = sand.u32 1, %s1288_s11  }
  0x15   : > { %s1056_s26 = smul.u32 100, %s1391_s25  ;;  %p1397_p0 = pnand %p1077_p13, %p1367_p4 }
  0x16   : > { %s1652_s24 = scalar_select %p1384_p11, 1, 0 }
  0x17   : > { %s1057_s27 = smul.u32 1600, %s1296_s13  ;;  %s148_s4 = scalar_lea.vmem [#allocation2], %s1056_s26 }
  0x18   : > { %s157_s5 = sshll.u32 %s148_s4, 4  ;;  %s145_s6 = scalar_lea.sflag [#allocation3], %s1391_s25  ;;  %s1406_s5 = int_to_ptr.vmem [resolvable:$true] %s157_s5 }
  0x19   : > { %s1404_s3 = scalar_lea.hbm %s1644_s0, %s1057_s27  ;;  %p1156_p3 = pneg %p1397_p0 }
  0x1a   : > { %s1154_s7 = scalar_lea.hbm %s1404_s3, 1600  ;;  %s1159_s16 = scalar_lea.hbm %s1644_s0, 3200 }
  0x1b   : > { %p1155_p2 = scmp.ne.s32.totalorder %s1404_s3, %s1154_s7  ;;  %p1160_p6 = scmp.lt.u32.totalorder %s1404_s3, %s1644_s0 }
  0x1c   : > { %p1161_p7 = scmp.lt.u32.totalorder %s1159_s16, %s1154_s7  ;;  %p1163_p13 = scmp.lt.u32.totalorder %s1154_s7, %s1404_s3 }
  0x1d   : > { %p1157_p4 = pnand %p1156_p3, %p1155_p2 }
  0x1e   : > { %p1162_p10 = por %p1161_p7, %p1160_p6 }
  0x1f   : > { %p1158_p5 = pneg %p1157_p4 }
  0x20   : > { %p1164_p12 = por %p1163_p13, %p1162_p10 }
  0x22   : > { %p1165_p1 = pnand %p1164_p12, %p1158_p5 }
  0x24   : > { %1168 = shalt.err (!%p1165_p1)
}
  0x25   : > { %s1169_s20 = scalar_lea.vmem %s1406_s5, 1600  ;;  %s1302_s26 = smov [#allocation2]  }
  0x26   : > { %p1170_p2 = scmp.ne.s32.totalorder %s1406_s5, %s1169_s20  ;;  %s1174_s27 = sshll.u32 %s1302_s26, 4  ;;  %s1175_s27 = int_to_ptr.vmem [resolvable:$false] %s1174_s27 }
  0x27   : > { %s1176_s29 = scalar_lea.vmem %s1175_s27, 3200  ;;  %p1177_p9 = scmp.lt.s32.totalorder %s1406_s5, %s1175_s27 }
  0x28   : > { %p1172_p4 = pnand %p1170_p2, %p1156_p3  ;;  %p1178_p6 = scmp.lt.s32.totalorder %s1176_s29, %s1169_s20 }
  0x2a   : > { %p1173_p11 = pneg %p1172_p4  ;;  %p1179_p7 = por %p1178_p6, %p1177_p9 }
  0x2c   : > { %p1180_p10 = pnand %p1179_p7, %p1173_p11 }
  0x2e   : > { %1183 = shalt.err (!%p1180_p10)
}
  0x2f   : > { %s1303_s30 = smov 64   ;;  %s1304_s4 = smov 4  }
  0x30   : > { %1069 = dma.hbm_to_vmem [thread:$0]  (!%p1397_p0), %s1404_s3, 1600, %s1406_s5, %s145_s6, %s1303_s30, %s1303_s30, %s1304_s4  }
  0x31   : > { %p187_p9 = scmp.lt.s32.totalorder %s1300_s14, 3  ;;  %s800_s7 = sshll.u32 %s1391_s25, 6 }
  0x32   : > { %s854_s8 = sshll.u32 %s1296_s13, 10  ;;  %p1654_p11 = scmp.ge.s32.totalorder %s1300_s14, 1 }
  0x33   : > { %s1452_s19 = scalar_lea.hbm %s1645_s1, %s854_s8  ;;  %s171_s20 = scalar_lea.vmem [#allocation5], %s800_s7 }
  0x34   : > { %p1445_p12 = pnand %p1654_p11, %p187_p9  ;;  %s179_s26 = sshll.u32 %s171_s20, 4  ;;  %s1454_s26 = int_to_ptr.vmem [resolvable:$true] %s179_s26 }
  0x35   : > { %s168_s3 = scalar_lea.sflag [#allocation6], %s1391_s25  ;;  %s1184_s5 = scalar_lea.hbm %s1452_s19, 1024 }
  0x36   : > { %p1185_p1 = scmp.ne.s32.totalorder %s1452_s19, %s1184_s5  ;;  %s1189_s29 = scalar_lea.hbm %s1645_s1, 2048 }
  0x37   : > { %p1190_p2 = scmp.lt.u32.totalorder %s1452_s19, %s1645_s1  ;;  %p1191_p4 = scmp.lt.u32.totalorder %s1189_s29, %s1184_s5 }
  0x38   : > { %p1187_p5 = pnand %p1185_p1, %p1156_p3  ;;  %p1193_p7 = scmp.lt.u32.totalorder %s1184_s5, %s1452_s19 }
  0x39   : > { %p1192_p6 = por %p1191_p4, %p1190_p2 }
  0x3a   : > { %p1188_p13 = pneg %p1187_p5 }
  0x3b   : > { %p1194_p10 = por %p1193_p7, %p1192_p6 }
  0x3d   : > { %p1195_p9 = pnand %p1194_p10, %p1188_p13 }
  0x3f   : > { %1198 = shalt.err (!%p1195_p9)
}
  0x40   : > { %s1199_s7 = scalar_lea.vmem %s1454_s26, 1024  ;;  %s1305_s18 = smov [#allocation5]  }
  0x41   : > { %p1200_p11 = scmp.ne.s32.totalorder %s1454_s26, %s1199_s7  ;;  %s1204_s20 = sshll.u32 %s1305_s18, 4  ;;  %s1205_s20 = int_to_ptr.vmem [resolvable:$false] %s1204_s20 }
  0x42   : > { %s1206_s6 = scalar_lea.vmem %s1205_s20, 2048  ;;  %p1207_p8 = scmp.lt.s32.totalorder %s1454_s26, %s1205_s20 }
  0x43   : > { %p1202_p1 = pnand %p1200_p11, %p1156_p3  ;;  %p1208_p2 = scmp.lt.s32.totalorder %s1206_s6, %s1199_s7 }
  0x45   : > { %p1203_p5 = pneg %p1202_p1  ;;  %p1209_p4 = por %p1208_p2, %p1207_p8 }
  0x47   : > { %p1210_p6 = pnand %p1209_p4, %p1203_p5 }
  0x49   : > { %1213 = shalt.err (!%p1210_p6)
}
  0x4a   : > { %1072 = dma.hbm_to_vmem [thread:$0]  (!%p1397_p0), %s1452_s19, 1024, %s1454_s26, %s168_s3, %s1303_s30, %s1303_s30, %s1304_s4  }
  0x4b   : > { %191 = sbr.rel (%p1445_p12) target bundleno = 399 (0x18f), region = 28  ;;  %s1488_s5 = sand.u32 (!%p1445_p12), 1, %s1284_s10  }
  0x4c   : > { %s1058_s27 = smul.u32 (!%p1445_p12), 100, %s1488_s5  ;;  %s194_s28 = scalar_lea.sflag (!%p1445_p12), [#allocation3], %s1488_s5 }
  0x4d   : > { %p1656_p8 = scmp.ne.s32.totalorder (!%p1445_p12), %s1650_s21, 0 }
  0x4e   : > { %s1494_s29 = scalar_lea.vmem (!%p1445_p12), [#allocation2], %s1058_s27 }
  0x52   : > { %1267 = dma.done.wait (%p1656_p8), %s194_s28, 1600  }
  0x53   : > { %1269 = vsyncadd (%p1656_p8), %s194_s28, 4294965696  ;;  %s804_s25 = sshll.u32 %s1488_s5, 6  ;;  %s203_s30 = scalar_lea.sflag [#allocation6], %s1488_s5 }
  0x54   : > { %s1502_s4 = scalar_lea.vmem [#allocation5], %s804_s25 }
  0x55   : > { %1271 = dma.done.wait (%p1656_p8), %s203_s30, 1024  }
  0x56   : > { %1273 = vsyncadd (%p1656_p8), %s203_s30, 4294966272  ;;  %v1306_v0 = vmov 0.0   ;;  %vm1307_vm0 = vmmov 0   ;;  %v1133_v1 = vld [vmem:[%s1502_s4] sm:$0xff]   ;;  %v1134_v2 = vld [vmem:[%s1502_s4 + $0x8] sm:$0xff]   ;;  %s1573_s21 = scalar_lea.vmem [#allocation7], %s1058_s27 }
  0x57   : > { %972 = vmatprep.subr.bf16.mxu0 %v1306_v0  ;;  %1040 = vmatprep.subr.bf16.mxu1 %v1306_v0  ;;  %v1135_v3 = vld [vmem:[%s1502_s4 + $0x10] sm:$0xff]   ;;  %v1136_v4 = vld [vmem:[%s1502_s4 + $0x18] sm:$0xff]   ;;  %v1137_v5 = vld [vmem:[%s1502_s4 + $0x20] sm:$0xff]   ;;  %s1059_s15 = smul.u32 1600, %s1292_s12  ;;  %s679_s19 = sshll.u32 %s1573_s21, 4  ;;  %s1594_s19 = int_to_ptr.vmem [resolvable:$true] %s679_s19 }
  0x58   : > { %988 = vmatprep.mubr.msk.bf16.mxu0 %vm1307_vm0, %v1306_v0  ;;  %1016 = vmatprep.mubr.msk.bf16.mxu1 %vm1307_vm0, %v1306_v0  ;;  %v1138_v6 = vld [vmem:[%s1502_s4 + $0x28] sm:$0xff]   ;;  %v1139_v7 = vld [vmem:[%s1502_s4 + $0x30] sm:$0xff]   ;;  %v1140_v8 = vld [vmem:[%s1502_s4 + $0x38] sm:$0xff]   ;;  %s663_s16 = scalar_lea.sflag [#allocation4], %s1488_s5  ;;  %s1214_s7 = scalar_lea.vmem %s1594_s19, 1600 }
  0x59   : > { %973 = vmatpush3.bf16.msra.mxu0 %v1133_v1  ;;  %1048 = vmatpush3.bf16.msra.mxu1 %v1133_v1  ;;  %v1141_v9 = vld [vmem:[%s1494_s29] sm:$0xff]   ;;  %v1142_v10 = vld [vmem:[%s1494_s29 + $0x38] sm:$0xff]   ;;  %v1143_v11 = vld [vmem:[%s1494_s29 + $0x8] sm:$0xff]   ;;  %s1592_s8 = scalar_lea.hbm %s1646_s2, %s1059_s15  ;;  %p1215_p0 = scmp.ne.s32.totalorder %s1594_s19, %s1214_s7 }
  0x5a   : > { %974 = vmatprep.subr.bf16.mxu0 %v1306_v0  ;;  %1041 = vmatprep.subr.bf16.mxu1 %v1306_v0  ;;  %v1144_v12 = vld [vmem:[%s1494_s29 + $0x40] sm:$0xff]   ;;  %v1145_v13 = vld [vmem:[%s1494_s29 + $0x10] sm:$0xff]   ;;  %v1146_v14 = vld [vmem:[%s1494_s29 + $0x48] sm:$0xff]   ;;  %p1657_p3 = scmp.ne.s32.totalorder %s1651_s22, 0  ;;  %s1308_s12 = smov [#allocation7]  }
  0x5b   : > { %v1147_v15 = vld [vmem:[%s1494_s29 + $0x18] sm:$0xff]   ;;  %v1148_v16 = vld [vmem:[%s1494_s29 + $0x50] sm:$0xff]   ;;  %v1149_v17 = vld [vmem:[%s1494_s29 + $0x20] sm:$0xff]   ;;  %s1218_s18 = sshll.u32 %s1308_s12, 4  ;;  %s1219_s18 = int_to_ptr.vmem [resolvable:$false] %s1218_s18 }
  0x5c   : > { %v1150_v18 = vld [vmem:[%s1494_s29 + $0x58] sm:$0xff]   ;;  %v1151_v19 = vld [vmem:[%s1494_s29 + $0x28] sm:$0xff]   ;;  %v1152_v20 = vld [vmem:[%s1494_s29 + $0x60] ss:$0 sps:$4 sm:$0xff]   ;;  %p1216_p12 = pnand %p1215_p0, %p1657_p3  ;;  %s1220_s20 = scalar_lea.vmem %s1219_s18, 3200 }
  0x5d   : > { %975 = vmatpush3.bf16.msra.mxu0 %v1134_v2  ;;  %1049 = vmatpush3.bf16.msra.mxu1 %v1134_v2  ;;  %v1153_v21 = vld [vmem:[%s1494_s29 + $0x30] sm:$0xff]   ;;  %p1221_p7 = scmp.lt.s32.totalorder %s1594_s19, %s1219_s18  ;;  %p1222_p10 = scmp.lt.s32.totalorder %s1220_s20, %s1214_s7 }
  0x5e   : > { %976 = vmatprep.subr.bf16.mxu0 %v1306_v0  ;;  %1042 = vmatprep.subr.bf16.mxu1 %v1306_v0  ;;  %p1217_p13 = pneg %p1216_p12 }
  0x5f   : > { %p1223_p9 = por %p1222_p10, %p1221_p7 }
  0x61   : > { %977 = vmatpush3.bf16.msra.mxu0 %v1135_v3  ;;  %1050 = vmatpush3.bf16.msra.mxu1 %v1135_v3  ;;  %p1224_p11 = pnand %p1223_p9, %p1217_p13 }
  0x62   : > { %978 = vmatprep.subr.bf16.mxu0 %v1306_v0  ;;  %1043 = vmatprep.subr.bf16.mxu1 %v1306_v0 }
  0x65   : > { %979 = vmatpush3.bf16.msra.mxu0 %v1136_v4  ;;  %1051 = vmatpush3.bf16.msra.mxu1 %v1136_v4 }
  0x66   : > { %980 = vmatprep.subr.bf16.mxu0 %v1306_v0  ;;  %1044 = vmatprep.subr.bf16.mxu1 %v1306_v0 }
  0x69   : > { %981 = vmatpush3.bf16.msra.mxu0 %v1137_v5  ;;  %1052 = vmatpush3.bf16.msra.mxu1 %v1137_v5 }
  0x6a   : > { %982 = vmatprep.subr.bf16.mxu0 %v1306_v0  ;;  %1045 = vmatprep.subr.bf16.mxu1 %v1306_v0 }
  0x6d   : > { %983 = vmatpush3.bf16.msra.mxu0 %v1138_v6  ;;  %1053 = vmatpush3.bf16.msra.mxu1 %v1138_v6 }
  0x6e   : > { %984 = vmatprep.subr.bf16.mxu0 %v1306_v0  ;;  %1046 = vmatprep.subr.bf16.mxu1 %v1306_v0 }
  0x71   : > { %985 = vmatpush3.bf16.msra.mxu0 %v1139_v7  ;;  %1054 = vmatpush3.bf16.msra.mxu1 %v1139_v7 }
  0x72   : > { %986 = vmatprep.subr.bf16.mxu0 %v1306_v0  ;;  %1047 = vmatprep.subr.bf16.mxu1 %v1306_v0 }
  0x75   : > { %987 = vmatpush3.bf16.msra.mxu0 %v1140_v8  ;;  %1055 = vmatpush3.bf16.msra.mxu1 %v1140_v8 }
  0x78   : > { %989 = vmatmul.mubr.bf16.vlgmr.msra.gmra.mrb[0].mxu0 %v1141_v9  ;;  %1017 = vmatmul.mubr.bf16.vlgmr.msra.gmra.mrb[0].mxu1 %v1142_v10 }
  0x79   : > { %992 = vmatprep.mubr.msk.bf16.mxu0 %vm1307_vm0, %v1306_v0  ;;  %1020 = vmatprep.mubr.msk.bf16.mxu1 %vm1307_vm0, %v1306_v0 }
  0x80   : > { %993 = vmatmul.mubr.bf16.gmra.mrb[4].mxu0 %v1143_v11  ;;  %1021 = vmatmul.mubr.bf16.gmra.mrb[4].mxu1 %v1144_v12 }
  0x81   : > { %996 = vmatprep.mubr.msk.bf16.mxu0 %vm1307_vm0, %v1306_v0  ;;  %1024 = vmatprep.mubr.msk.bf16.mxu1 %vm1307_vm0, %v1306_v0 }
  0x88   : > { %997 = vmatmul.mubr.bf16.gmra.mrb[8].mxu0 %v1145_v13  ;;  %1025 = vmatmul.mubr.bf16.gmra.mrb[8].mxu1 %v1146_v14 }
  0x89   : > { %1000 = vmatprep.mubr.msk.bf16.mxu0 %vm1307_vm0, %v1306_v0  ;;  %1028 = vmatprep.mubr.msk.bf16.mxu1 %vm1307_vm0, %v1306_v0 }
  0x90   : > { %1001 = vmatmul.mubr.bf16.gmra.mrb[12].mxu0 %v1147_v15  ;;  %1029 = vmatmul.mubr.bf16.gmra.mrb[12].mxu1 %v1148_v16 }
  0x91   : > { %1004 = vmatprep.mubr.msk.bf16.mxu0 %vm1307_vm0, %v1306_v0  ;;  %1032 = vmatprep.mubr.msk.bf16.mxu1 %vm1307_vm0, %v1306_v0 }
  0x98   : > { %1005 = vmatmul.mubr.bf16.gmra.mrb[16].mxu0 %v1149_v17  ;;  %1033 = vmatmul.mubr.bf16.gmra.mrb[16].mxu1 %v1150_v18 }
  0x99   : > { %1008 = vmatprep.mubr.msk.bf16.mxu0 %vm1307_vm0, %v1306_v0  ;;  %1036 = vmatprep.mubr.msk.bf16.mxu1 %vm1307_vm0, %v1306_v0 }
  0xa0   : > { %1009 = vmatmul.mubr.bf16.gmra.mrb[20].mxu0 %v1151_v19  ;;  %1037 = vmatmul.mubr.bf16.gmra.mrb[20].mxu1 %v1152_v20 }
  0xa1   : > { %1012 = vmatprep.mubr.msk.bf16.mxu0 %vm1307_vm0, %v1306_v0 }
  0xa8   : > { %1013 = vmatmul.mubr.bf16.gmra.mrb[24].mxu0 %v1153_v21 }
 0x14b   : > { %v434_v22 = vpop.f32.mrb[0].mxu0  ;;  %v490_v23 = vpop.f32.mrb[0].mxu1 }
 0x14c   : > { %v990_v24 = vpop.f32.mrb[1].mxu0  ;;  %v1018_v25 = vpop.f32.mrb[1].mxu1 }
 0x14d   : > { %v437_v26 = vpop.f32.mrb[2].mxu0  ;;  %v493_v27 = vpop.f32.mrb[2].mxu1 }
 0x14e   : > { %v883_v28 = vpack.c.bf16 %v437_v26, %v434_v22  ;;  %v991_v29 = vpop.f32.mrb[3].mxu0  ;;  %v918_v30 = vpack.c.bf16 %v493_v27, %v490_v23  ;;  %v1019_v31 = vpop.f32.mrb[3].mxu1 }
 0x150   : > { %884 = vst [vmem:[%s1573_s21] sm:$0xff] %v883_v28   ;;  %946 = vst [vmem:[%s1573_s21 + $0x38] sm:$0xff] %v918_v30  }
 0x153   : > { %v442_v32 = vpop.f32.mrb[4].mxu0  ;;  %v498_v33 = vpop.f32.mrb[4].mxu1 }
 0x154   : > { %v994_v34 = vpop.f32.mrb[5].mxu0  ;;  %v1022_v35 = vpop.f32.mrb[5].mxu1 }
 0x155   : > { %v445_v36 = vpop.f32.mrb[6].mxu0  ;;  %v501_v37 = vpop.f32.mrb[6].mxu1 }
 0x156   : > { %v888_v38 = vpack.c.bf16 %v445_v36, %v442_v32  ;;  %v995_v39 = vpop.f32.mrb[7].mxu0  ;;  %v923_v40 = vpack.c.bf16 %v501_v37, %v498_v33  ;;  %v1023_v41 = vpop.f32.mrb[7].mxu1 }
 0x158   : > { %940 = vst [vmem:[%s1573_s21 + $0x8] sm:$0xff] %v888_v38   ;;  %947 = vst [vmem:[%s1573_s21 + $0x40] sm:$0xff] %v923_v40  }
 0x15b   : > { %v450_v42 = vpop.f32.mrb[8].mxu0  ;;  %v506_v43 = vpop.f32.mrb[8].mxu1 }
 0x15c   : > { %v998_v44 = vpop.f32.mrb[9].mxu0  ;;  %v1026_v45 = vpop.f32.mrb[9].mxu1 }
 0x15d   : > { %v453_v46 = vpop.f32.mrb[10].mxu0  ;;  %v509_v47 = vpop.f32.mrb[10].mxu1 }
 0x15e   : > { %v893_v48 = vpack.c.bf16 %v453_v46, %v450_v42  ;;  %v999_v49 = vpop.f32.mrb[11].mxu0  ;;  %v928_v50 = vpack.c.bf16 %v509_v47, %v506_v43  ;;  %v1027_v51 = vpop.f32.mrb[11].mxu1 }
 0x160   : > { %941 = vst [vmem:[%s1573_s21 + $0x10] sm:$0xff] %v893_v48   ;;  %948 = vst [vmem:[%s1573_s21 + $0x48] sm:$0xff] %v928_v50  }
 0x163   : > { %v458_v52 = vpop.f32.mrb[12].mxu0  ;;  %v514_v53 = vpop.f32.mrb[12].mxu1 }
 0x164   : > { %v1002_v54 = vpop.f32.mrb[13].mxu0  ;;  %v1030_v55 = vpop.f32.mrb[13].mxu1 }
 0x165   : > { %v461_v56 = vpop.f32.mrb[14].mxu0  ;;  %v517_v57 = vpop.f32.mrb[14].mxu1 }
 0x166   : > { %v898_v58 = vpack.c.bf16 %v461_v56, %v458_v52  ;;  %v1003_v59 = vpop.f32.mrb[15].mxu0  ;;  %v933_v60 = vpack.c.bf16 %v517_v57, %v514_v53  ;;  %v1031_v61 = vpop.f32.mrb[15].mxu1 }
 0x168   : > { %942 = vst [vmem:[%s1573_s21 + $0x18] sm:$0xff] %v898_v58   ;;  %949 = vst [vmem:[%s1573_s21 + $0x50] sm:$0xff] %v933_v60  }
 0x16b   : > { %v466_v62 = vpop.f32.mrb[16].mxu0  ;;  %v522_v63 = vpop.f32.mrb[16].mxu1 }
 0x16c   : > { %v1006_v0 = vpop.f32.mrb[17].mxu0  ;;  %v1034_v1 = vpop.f32.mrb[17].mxu1 }
 0x16d   : > { %v469_v2 = vpop.f32.mrb[18].mxu0  ;;  %v525_v3 = vpop.f32.mrb[18].mxu1 }
 0x16e   : > { %v903_v4 = vpack.c.bf16 %v469_v2, %v466_v62  ;;  %v1007_v5 = vpop.f32.mrb[19].mxu0  ;;  %v938_v6 = vpack.c.bf16 %v525_v3, %v522_v63  ;;  %v1035_v7 = vpop.f32.mrb[19].mxu1 }
 0x170   : > { %943 = vst [vmem:[%s1573_s21 + $0x20] sm:$0xff] %v903_v4   ;;  %950 = vst [vmem:[%s1573_s21 + $0x58] sm:$0xff] %v938_v6  }
 0x173   : > { %v474_v8 = vpop.f32.mrb[20].mxu0  ;;  %v530_v9 = vpop.f32.mrb[20].mxu1 }
 0x174   : > { %v1010_v10 = vpop.f32.mrb[21].mxu0  ;;  %v879_v11 = vpack.c.bf16 %v530_v9, %v530_v9  ;;  %v1038_v12 = vpop.f32.mrb[21].mxu1 }
 0x175   : > { %v477_v13 = vpop.f32.mrb[22].mxu0  ;;  %v533_v14 = vpop.f32.mrb[22].mxu1 }
 0x176   : > { %v908_v15 = vpack.c.bf16 %v477_v13, %v474_v8  ;;  %v1011_v16 = vpop.f32.mrb[23].mxu0  ;;  %661 = vst [vmem:[%s1573_s21 + $0x60] sm:$0xf] %v879_v11  ;;  %v1039_v17 = vpop.f32.mrb[23].mxu1 }
 0x178   : > { %944 = vst [vmem:[%s1573_s21 + $0x28] sm:$0xff] %v908_v15  }
 0x17b   : > { %v482_v18 = vpop.f32.mrb[24].mxu0 }
 0x17c   : > { %v1014_v19 = vpop.f32.mrb[25].mxu0 }
 0x17d   : > { %v485_v20 = vpop.f32.mrb[26].mxu0 }
 0x17e   : > { %v913_v21 = vpack.c.bf16 %v485_v20, %v482_v18  ;;  %v1015_v22 = vpop.f32.mrb[27].mxu0 }
 0x180   : > { %945 = vst [vmem:[%s1573_s21 + $0x30] sm:$0xff] %v913_v21  }
 0x181   : > { %1227 = shalt.err (!%p1224_p11)
}
 0x182   : > { %s1228_s6 = scalar_lea.hbm %s1592_s8, 1600  ;;  %s1232_s29 = scalar_lea.hbm %s1646_s2, 3200 }
 0x183   : > { %p1229_p1 = scmp.ne.s32.totalorder %s1592_s8, %s1228_s6  ;;  %p1233_p4 = scmp.lt.u32.totalorder %s1592_s8, %s1646_s2 }
 0x184   : > { %p1234_p6 = scmp.lt.u32.totalorder %s1232_s29, %s1228_s6  ;;  %p1236_p0 = scmp.lt.u32.totalorder %s1228_s6, %s1592_s8 }
 0x185   : > { %p1230_p5 = pnand %p1229_p1, %p1657_p3 }
 0x186   : > { %p1235_p8 = por %p1234_p6, %p1233_p4 }
 0x187   : > { %p1231_p2 = pneg %p1230_p5 }
 0x188   : > { %p1237_p12 = por %p1236_p0, %p1235_p8 }
 0x18a   : > { %p1238_p13 = pnand %p1237_p12, %p1231_p2 }
 0x18c   : > { %1241 = shalt.err (!%p1238_p13)
}
 0x18d   : > { %s1309_s4 = smov 64   ;;  %s1310_s21 = smov 4  }
 0x18e   : > { %1064 = dma.vmem_to_hbm [thread:$0]  (%p1657_p3), %s1594_s19, 1600, %s1592_s8, %s663_s16, %s1309_s4, %s1309_s4, %s1310_s21  }
 0x18f PF: > { %s694_s15 = sand.u32 1, %s1280_s9   ;;  %p1658_p7 = scmp.ne.s32.totalorder %s1652_s24, 0 }
 0x190   : > { %p1659_p10 = scmp.ge.s32.totalorder %s1300_s14, 2  ;;  %s695_s26 = scalar_lea.sflag [#allocation4], %s694_s15 }
 0x192   : > { %p1074_p9 = pnand %p1659_p10, %p1658_p7 }
 0x194   : > { %1275 = dma.done.wait (!%p1074_p9), %s695_s26, 1600  }
 0x195   : > { %1277 = vsyncadd (!%p1074_p9), %s695_s26, 4294965696  ;;  %s21_s14 = sadd.s32 1, %s1300_s14   ;;  %s1660_s9 = smov %s1284_s10 }
 0x196   : > { %p18_p11 = scmp.ge.s32.totalorder %s21_s14, 4   ;;  %s1661_s10 = smov %s1288_s11 }
 0x197   : > { %s1662_s11 = smov %s1382_s23  ;;  %s1663_s12 = smov %s1296_s13 }
 0x198   : > { %s1664_s13 = smov %s1666_s17  ;;  %20 = sbr.rel (!%p18_p11) target bundleno = 8 (0x8), region = 86 }
 0x19f   :  { %700 = vsyncpa [#allocation3], 1 }
 0x1a0   :  { %702 = vsyncpa [#allocation3 + $0x1], 1 }
 0x1a1   :  { %703 = vsyncpa [#allocation6], 1 }
 0x1a2   :  { %705 = vsyncpa [#allocation6 + $0x1], 1 }
 0x1a3   :  { %706 = vsyncpa [#allocation4], 1 }
 0x1a4   :  { %708 = vsyncpa [#allocation4 + $0x1], 1 }

</bundles_post_ra>
